<compile_context>
chip_gen: v7x
topology: tpu7x:2x2x1
jax: 0.10.0
libtpu: 0.0.40
codegen_flags: <defaults>
</compile_context>

<pallas_src>
import jax
import jax.numpy as jnp
from jax.experimental import pallas as pl
from jax.experimental.pallas import tpu as pltpu

EPS = 1e-5  # nn.InstanceNorm2d default eps


def double_conv(x_nchw, w1_oihw, b1, w2_oihw, b2):
    """(conv3x3 -> InstanceNorm -> ReLU) * 2, NCHW in / NCHW out."""
    N, Cin, H, W = x_nchw.shape
    Cout = w1_oihw.shape[0]
    Hp, Wp = H + 2, W + 2
    L = ((Hp * Wp + 127) // 128) * 128   # lane-dense flattened padded spatial extent
    inv_n = 1.0 / float(H * W)

    # --- glue (plain JAX): place the image at [0:H, 0:W] of an (Hp, Wp) zero canvas,
    #     flatten spatial onto lanes, pad lanes to a multiple of 128.  With this
    #     placement both convs use centered tap offsets s = (dy-1)*Wp + (dx-1); any
    #     out-of-image (rolled) access lands on a zero canvas/tail position.
    xp = jnp.pad(x_nchw, ((0, 0), (0, 0), (0, 2), (0, 2)))
    xpf = jnp.pad(xp.reshape(N, Cin, Hp * Wp),
                  ((0, 0), (0, 0), (0, L - Hp * Wp)))          # (N, Cin, L) f32

    # OIHW -> (tap = dy*3+dx, Cout, Cin), bf16 (MXU-native).  Biases are dropped:
    # they cancel exactly under affine-free InstanceNorm.
    w1t = jnp.transpose(w1_oihw, (2, 3, 0, 1)).reshape(9, Cout, Cin).astype(jnp.bfloat16)
    w2t = jnp.transpose(w2_oihw, (2, 3, 0, 1)).reshape(9, Cout, Cout).astype(jnp.bfloat16)
    del b1, b2

    # validity mask over the flattened padded canvas: 1 inside HxW, 0 in padding/tail.
    yy = jax.lax.broadcasted_iota(jnp.int32, (Hp, Wp), 0)
    xx = jax.lax.broadcasted_iota(jnp.int32, (Hp, Wp), 1)
    vmask = ((yy < H) & (xx < W)).astype(jnp.float32).reshape(1, Hp * Wp)
    vmask = jnp.pad(vmask, ((0, 0), (0, L - Hp * Wp)))         # (1, L) f32

    def kernel(xpf_ref, w1_ref, w2_ref, vm_ref, o_ref):
        x = xpf_ref[0]        # (Cin, L) f32
        vm = vm_ref[...]      # (1, L)  f32

        def conv3x3(a, w_ref, cout):
            # a: (C, L) f32.  Tap shift = lane roll (XLU); matmul = bf16 MXU with
            # f32 accumulation into a lane-dense (cout, L) accumulator.
            acc = jnp.zeros((cout, L), jnp.float32)
            for dy in range(3):
                for dx in range(3):
                    s = (dy - 1) * Wp + (dx - 1)
                    a_s = a if s == 0 else pltpu.roll(a, shift=(-s) % L, axis=1)
                    acc = acc + jnp.dot(w_ref[dy * 3 + dx],
                                        a_s.astype(jnp.bfloat16),
                                        preferred_element_type=jnp.float32)
            return acc

        def inorm_relu(acc):
            # masked one-pass InstanceNorm (biased var, no affine, eps=1e-5) + ReLU.
            am = acc * vm
            mean = jnp.sum(am, axis=1, keepdims=True) * inv_n
            ex2 = jnp.sum(am * acc, axis=1, keepdims=True) * inv_n
            var = ex2 - mean * mean
            h = (acc - mean) * jax.lax.rsqrt(var + EPS)
            return jnp.maximum(h, 0.0) * vm   # re-zero padding for the next conv

        h1 = inorm_relu(conv3x3(x, w1_ref, Cout))
        h2 = inorm_relu(conv3x3(h1, w2_ref, Cout))
        o_ref[0] = h2.astype(o_ref.dtype)

    # TODO(synk): for UNet-scale shapes (e.g. 256x256x64) tile spatially over H with a
    # 1-row halo and a two-pass InstanceNorm so per-step blocks fit v7x's 64 MiB VMEM.
    out_flat = pl.pallas_call(
        kernel,
        out_shape=jax.ShapeDtypeStruct((N, Cout, L), jnp.float32),
        grid_spec=pl.GridSpec(
            grid=(N,),
            in_specs=[
                pl.BlockSpec((1, Cin, L), lambda n: (n, 0, 0)),
                pl.BlockSpec((9, Cout, Cin), lambda n: (0, 0, 0)),   # weights resident
                pl.BlockSpec((9, Cout, Cout), lambda n: (0, 0, 0)),
                pl.BlockSpec((1, L), lambda n: (0, 0)),
            ],
            out_specs=pl.BlockSpec((1, Cout, L), lambda n: (n, 0, 0)),
        ),
        compiler_params=pltpu.CompilerParams(
            dimension_semantics=("parallel",)),   # batch shards across v7x's 2 TCs
    )(xpf, w1t, w2t, vmask)

    # lane-dense (N, Cout, L) is already channel-major: slice the valid HxW window.
    return out_flat[:, :, :Hp * Wp].reshape(N, Cout, Hp, Wp)[:, :, :H, :W]


def _reference(x, w1, b1, w2, b2):
    """Pure-JAX f32 reference matching the PyTorch module (bias + IN + ReLU, twice)."""
    def block(x, w, b):
        y = jax.lax.conv_general_dilated(
            x, w, window_strides=(1, 1), padding="SAME",
            dimension_numbers=("NCHW", "OIHW", "NCHW"))
        y = y + b[None, :, None, None]
        m = jnp.mean(y, axis=(2, 3), keepdims=True)
        v = jnp.mean((y - m) ** 2, axis=(2, 3), keepdims=True)
        y = (y - m) * jax.lax.rsqrt(v + EPS)
        return jnp.maximum(y, 0.0)
    return block(block(x, w1, b1), w2, b2)


if __name__ == "__main__":
    N, Cin, Cout, H, W = 2, 4, 8, 16, 16

    key = jax.random.PRNGKey(0)
    kx, kw1, kb1, kw2, kb2 = jax.random.split(key, 5)
    x = jax.random.normal(kx, (N, Cin, H, W), dtype=jnp.float32)
    # PyTorch Conv2d shapes: OIHW weights + per-channel bias
    w1 = jax.random.normal(kw1, (Cout, Cin, 3, 3), dtype=jnp.float32) * 0.1
    b1 = jax.random.normal(kb1, (Cout,), dtype=jnp.float32) * 0.1
    w2 = jax.random.normal(kw2, (Cout, Cout, 3, 3), dtype=jnp.float32) * 0.1
    b2 = jax.random.normal(kb2, (Cout,), dtype=jnp.float32) * 0.1

    out = jax.block_until_ready(double_conv(x, w1, b1, w2, b2))
    ref = _reference(x, w1, b1, w2, b2)

    assert out.shape == (N, Cout, H, W)
    # bf16 MXU operands (f32 accumulation) -> loosened tolerance per review.
    assert jnp.allclose(out, ref, atol=5e-2, rtol=5e-2), (
        f"mismatch vs reference: max abs err = {float(jnp.max(jnp.abs(out - ref)))}")

    print("KERNEL_OK")
</pallas_src>

<mosaic_0001>
module attributes {stable_mosaic.version = 11 : i64} {
  func.func @kernel(%arg0: i32, %arg1: memref<1x4x384xf32, #tpu.memory_space<vmem>>, %arg2: memref<9x8x4xbf16, #tpu.memory_space<vmem>>, %arg3: memref<9x8x8xbf16, #tpu.memory_space<vmem>>, %arg4: memref<1x384xf32, #tpu.memory_space<vmem>>, %arg5: memref<1x8x384xf32, #tpu.memory_space<vmem>>) attributes {dimension_semantics = [#tpu.dimension_semantics<parallel>], iteration_bounds = array<i64: 2>, scalar_prefetch = 0 : i64, scratch_operands = 0 : i64, tpu.core_type = #tpu.core_type<tc>, window_params = [{transform_indices = @transform_0, window_bounds = array<i64: 1, 4, 384>}, {pipeline_mode = #tpu.pipeline_mode<synchronous>, transform_indices = @transform_1, window_bounds = array<i64: 9, 8, 4>}, {pipeline_mode = #tpu.pipeline_mode<synchronous>, transform_indices = @transform_2, window_bounds = array<i64: 9, 8, 8>}, {pipeline_mode = #tpu.pipeline_mode<synchronous>, transform_indices = @transform_3, window_bounds = array<i64: 1, 384>}, {transform_indices = @transform_4, window_bounds = array<i64: 1, 8, 384>}]} {
    %c0 = arith.constant 0 : index
    %c0_0 = arith.constant 0 : index
    %c0_1 = arith.constant 0 : index
    %0 = vector.load %arg1[%c0, %c0_0, %c0_1] : memref<1x4x384xf32, #tpu.memory_space<vmem>>, vector<1x4x384xf32>
    %1 = vector.shape_cast %0 : vector<1x4x384xf32> to vector<4x384xf32>
    %c0_2 = arith.constant 0 : index
    %c0_3 = arith.constant 0 : index
    %2 = vector.load %arg4[%c0_2, %c0_3] : memref<1x384xf32, #tpu.memory_space<vmem>>, vector<1x384xf32>
    %cst = arith.constant 0.000000e+00 : f32
    %3 = vector.broadcast %cst : f32 to vector<8x384xf32>
    %c19_i32 = arith.constant 19 : i32
    %4 = tpu.dynamic_rotate %1 by %c19_i32 dim 1 : vector<4x384xf32>, i32 -> vector<4x384xf32>
    %c0_4 = arith.constant 0 : index
    %c0_5 = arith.constant 0 : index
    %c0_6 = arith.constant 0 : index
    %5 = vector.load %arg2[%c0_4, %c0_5, %c0_6] : memref<9x8x4xbf16, #tpu.memory_space<vmem>>, vector<1x8x4xbf16>
    %6 = vector.shape_cast %5 : vector<1x8x4xbf16> to vector<8x4xbf16>
    %7 = arith.truncf %4 : vector<4x384xf32> to vector<4x384xbf16>
    %cst_7 = arith.constant dense<0.000000e+00> : vector<8x384xf32>
    %8 = tpu.matmul %6, %7, %cst_7 {dimension_numbers = #tpu.dot_dimension_numbers<[1], [0], [0], [1], [0, 0, 1, 1], [], []>} : vector<8x4xbf16>, vector<4x384xbf16>, vector<8x384xf32> -> vector<8x384xf32>
    %9 = arith.addf %3, %8 : vector<8x384xf32>
    %c18_i32 = arith.constant 18 : i32
    %10 = tpu.dynamic_rotate %1 by %c18_i32 dim 1 : vector<4x384xf32>, i32 -> vector<4x384xf32>
    %c1 = arith.constant 1 : index
    %c0_8 = arith.constant 0 : index
    %c0_9 = arith.constant 0 : index
    %11 = vector.load %arg2[%c1, %c0_8, %c0_9] : memref<9x8x4xbf16, #tpu.memory_space<vmem>>, vector<1x8x4xbf16>
    %12 = vector.shape_cast %11 : vector<1x8x4xbf16> to vector<8x4xbf16>
    %13 = arith.truncf %10 : vector<4x384xf32> to vector<4x384xbf16>
    %cst_10 = arith.constant dense<0.000000e+00> : vector<8x384xf32>
    %14 = tpu.matmul %12, %13, %cst_10 {dimension_numbers = #tpu.dot_dimension_numbers<[1], [0], [0], [1], [0, 0, 1, 1], [], []>} : vector<8x4xbf16>, vector<4x384xbf16>, vector<8x384xf32> -> vector<8x384xf32>
    %15 = arith.addf %9, %14 : vector<8x384xf32>
    %c17_i32 = arith.constant 17 : i32
    %16 = tpu.dynamic_rotate %1 by %c17_i32 dim 1 : vector<4x384xf32>, i32 -> vector<4x384xf32>
    %c2 = arith.constant 2 : index
    %c0_11 = arith.constant 0 : index
    %c0_12 = arith.constant 0 : index
    %17 = vector.load %arg2[%c2, %c0_11, %c0_12] : memref<9x8x4xbf16, #tpu.memory_space<vmem>>, vector<1x8x4xbf16>
    %18 = vector.shape_cast %17 : vector<1x8x4xbf16> to vector<8x4xbf16>
    %19 = arith.truncf %16 : vector<4x384xf32> to vector<4x384xbf16>
    %cst_13 = arith.constant dense<0.000000e+00> : vector<8x384xf32>
    %20 = tpu.matmul %18, %19, %cst_13 {dimension_numbers = #tpu.dot_dimension_numbers<[1], [0], [0], [1], [0, 0, 1, 1], [], []>} : vector<8x4xbf16>, vector<4x384xbf16>, vector<8x384xf32> -> vector<8x384xf32>
    %21 = arith.addf %15, %20 : vector<8x384xf32>
    %c1_i32 = arith.constant 1 : i32
    %22 = tpu.dynamic_rotate %1 by %c1_i32 dim 1 : vector<4x384xf32>, i32 -> vector<4x384xf32>
    %c3 = arith.constant 3 : index
    %c0_14 = arith.constant 0 : index
    %c0_15 = arith.constant 0 : index
    %23 = vector.load %arg2[%c3, %c0_14, %c0_15] : memref<9x8x4xbf16, #tpu.memory_space<vmem>>, vector<1x8x4xbf16>
    %24 = vector.shape_cast %23 : vector<1x8x4xbf16> to vector<8x4xbf16>
    %25 = arith.truncf %22 : vector<4x384xf32> to vector<4x384xbf16>
    %cst_16 = arith.constant dense<0.000000e+00> : vector<8x384xf32>
    %26 = tpu.matmul %24, %25, %cst_16 {dimension_numbers = #tpu.dot_dimension_numbers<[1], [0], [0], [1], [0, 0, 1, 1], [], []>} : vector<8x4xbf16>, vector<4x384xbf16>, vector<8x384xf32> -> vector<8x384xf32>
    %27 = arith.addf %21, %26 : vector<8x384xf32>
    %c4 = arith.constant 4 : index
    %c0_17 = arith.constant 0 : index
    %c0_18 = arith.constant 0 : index
    %28 = vector.load %arg2[%c4, %c0_17, %c0_18] : memref<9x8x4xbf16, #tpu.memory_space<vmem>>, vector<1x8x4xbf16>
    %29 = vector.shape_cast %28 : vector<1x8x4xbf16> to vector<8x4xbf16>
    %30 = arith.truncf %1 : vector<4x384xf32> to vector<4x384xbf16>
    %cst_19 = arith.constant dense<0.000000e+00> : vector<8x384xf32>
    %31 = tpu.matmul %29, %30, %cst_19 {dimension_numbers = #tpu.dot_dimension_numbers<[1], [0], [0], [1], [0, 0, 1, 1], [], []>} : vector<8x4xbf16>, vector<4x384xbf16>, vector<8x384xf32> -> vector<8x384xf32>
    %32 = arith.addf %27, %31 : vector<8x384xf32>
    %c383_i32 = arith.constant 383 : i32
    %33 = tpu.dynamic_rotate %1 by %c383_i32 dim 1 : vector<4x384xf32>, i32 -> vector<4x384xf32>
    %c5 = arith.constant 5 : index
    %c0_20 = arith.constant 0 : index
    %c0_21 = arith.constant 0 : index
    %34 = vector.load %arg2[%c5, %c0_20, %c0_21] : memref<9x8x4xbf16, #tpu.memory_space<vmem>>, vector<1x8x4xbf16>
    %35 = vector.shape_cast %34 : vector<1x8x4xbf16> to vector<8x4xbf16>
    %36 = arith.truncf %33 : vector<4x384xf32> to vector<4x384xbf16>
    %cst_22 = arith.constant dense<0.000000e+00> : vector<8x384xf32>
    %37 = tpu.matmul %35, %36, %cst_22 {dimension_numbers = #tpu.dot_dimension_numbers<[1], [0], [0], [1], [0, 0, 1, 1], [], []>} : vector<8x4xbf16>, vector<4x384xbf16>, vector<8x384xf32> -> vector<8x384xf32>
    %38 = arith.addf %32, %37 : vector<8x384xf32>
    %c367_i32 = arith.constant 367 : i32
    %39 = tpu.dynamic_rotate %1 by %c367_i32 dim 1 : vector<4x384xf32>, i32 -> vector<4x384xf32>
    %c6 = arith.constant 6 : index
    %c0_23 = arith.constant 0 : index
    %c0_24 = arith.constant 0 : index
    %40 = vector.load %arg2[%c6, %c0_23, %c0_24] : memref<9x8x4xbf16, #tpu.memory_space<vmem>>, vector<1x8x4xbf16>
    %41 = vector.shape_cast %40 : vector<1x8x4xbf16> to vector<8x4xbf16>
    %42 = arith.truncf %39 : vector<4x384xf32> to vector<4x384xbf16>
    %cst_25 = arith.constant dense<0.000000e+00> : vector<8x384xf32>
    %43 = tpu.matmul %41, %42, %cst_25 {dimension_numbers = #tpu.dot_dimension_numbers<[1], [0], [0], [1], [0, 0, 1, 1], [], []>} : vector<8x4xbf16>, vector<4x384xbf16>, vector<8x384xf32> -> vector<8x384xf32>
    %44 = arith.addf %38, %43 : vector<8x384xf32>
    %c366_i32 = arith.constant 366 : i32
    %45 = tpu.dynamic_rotate %1 by %c366_i32 dim 1 : vector<4x384xf32>, i32 -> vector<4x384xf32>
    %c7 = arith.constant 7 : index
    %c0_26 = arith.constant 0 : index
    %c0_27 = arith.constant 0 : index
    %46 = vector.load %arg2[%c7, %c0_26, %c0_27] : memref<9x8x4xbf16, #tpu.memory_space<vmem>>, vector<1x8x4xbf16>
    %47 = vector.shape_cast %46 : vector<1x8x4xbf16> to vector<8x4xbf16>
    %48 = arith.truncf %45 : vector<4x384xf32> to vector<4x384xbf16>
    %cst_28 = arith.constant dense<0.000000e+00> : vector<8x384xf32>
    %49 = tpu.matmul %47, %48, %cst_28 {dimension_numbers = #tpu.dot_dimension_numbers<[1], [0], [0], [1], [0, 0, 1, 1], [], []>} : vector<8x4xbf16>, vector<4x384xbf16>, vector<8x384xf32> -> vector<8x384xf32>
    %50 = arith.addf %44, %49 : vector<8x384xf32>
    %c365_i32 = arith.constant 365 : i32
    %51 = tpu.dynamic_rotate %1 by %c365_i32 dim 1 : vector<4x384xf32>, i32 -> vector<4x384xf32>
    %c8 = arith.constant 8 : index
    %c0_29 = arith.constant 0 : index
    %c0_30 = arith.constant 0 : index
    %52 = vector.load %arg2[%c8, %c0_29, %c0_30] : memref<9x8x4xbf16, #tpu.memory_space<vmem>>, vector<1x8x4xbf16>
    %53 = vector.shape_cast %52 : vector<1x8x4xbf16> to vector<8x4xbf16>
    %54 = arith.truncf %51 : vector<4x384xf32> to vector<4x384xbf16>
    %cst_31 = arith.constant dense<0.000000e+00> : vector<8x384xf32>
    %55 = tpu.matmul %53, %54, %cst_31 {dimension_numbers = #tpu.dot_dimension_numbers<[1], [0], [0], [1], [0, 0, 1, 1], [], []>} : vector<8x4xbf16>, vector<4x384xbf16>, vector<8x384xf32> -> vector<8x384xf32>
    %56 = arith.addf %50, %55 : vector<8x384xf32>
    %57 = vector.broadcast %2 : vector<1x384xf32> to vector<8x384xf32>
    %58 = arith.mulf %56, %57 : vector<8x384xf32>
    %cst_32 = arith.constant dense<0.000000e+00> : vector<8xf32>
    %59 = vector.multi_reduction <add>, %58, %cst_32 [1] : vector<8x384xf32> to vector<8xf32>
    %60 = vector.shape_cast %59 : vector<8xf32> to vector<8x1xf32>
    %cst_33 = arith.constant 3.906250e-03 : f32
    %61 = vector.broadcast %cst_33 : f32 to vector<8x1xf32>
    %62 = arith.mulf %60, %61 : vector<8x1xf32>
    %63 = arith.mulf %58, %56 : vector<8x384xf32>
    %cst_34 = arith.constant dense<0.000000e+00> : vector<8xf32>
    %64 = vector.multi_reduction <add>, %63, %cst_34 [1] : vector<8x384xf32> to vector<8xf32>
    %65 = vector.shape_cast %64 : vector<8xf32> to vector<8x1xf32>
    %cst_35 = arith.constant 3.906250e-03 : f32
    %66 = vector.broadcast %cst_35 : f32 to vector<8x1xf32>
    %67 = arith.mulf %65, %66 : vector<8x1xf32>
    %68 = arith.mulf %62, %62 : vector<8x1xf32>
    %69 = arith.subf %67, %68 : vector<8x1xf32>
    %70 = vector.broadcast %62 : vector<8x1xf32> to vector<8x384xf32>
    %71 = arith.subf %56, %70 : vector<8x384xf32>
    %cst_36 = arith.constant 9.99999974E-6 : f32
    %72 = vector.broadcast %cst_36 : f32 to vector<8x1xf32>
    %73 = arith.addf %69, %72 : vector<8x1xf32>
    %74 = math.rsqrt %73 : vector<8x1xf32>
    %75 = vector.broadcast %74 : vector<8x1xf32> to vector<8x384xf32>
    %76 = arith.mulf %71, %75 : vector<8x384xf32>
    %cst_37 = arith.constant 0.000000e+00 : f32
    %77 = vector.broadcast %cst_37 : f32 to vector<8x384xf32>
    %78 = arith.maximumf %76, %77 : vector<8x384xf32>
    %79 = vector.broadcast %2 : vector<1x384xf32> to vector<8x384xf32>
    %80 = arith.mulf %78, %79 : vector<8x384xf32>
    %cst_38 = arith.constant 0.000000e+00 : f32
    %81 = vector.broadcast %cst_38 : f32 to vector<8x384xf32>
    %c19_i32_39 = arith.constant 19 : i32
    %82 = tpu.dynamic_rotate %80 by %c19_i32_39 dim 1 : vector<8x384xf32>, i32 -> vector<8x384xf32>
    %c0_40 = arith.constant 0 : index
    %c0_41 = arith.constant 0 : index
    %c0_42 = arith.constant 0 : index
    %83 = vector.load %arg3[%c0_40, %c0_41, %c0_42] : memref<9x8x8xbf16, #tpu.memory_space<vmem>>, vector<1x8x8xbf16>
    %84 = vector.shape_cast %83 : vector<1x8x8xbf16> to vector<8x8xbf16>
    %85 = arith.truncf %82 : vector<8x384xf32> to vector<8x384xbf16>
    %cst_43 = arith.constant dense<0.000000e+00> : vector<8x384xf32>
    %86 = tpu.matmul %84, %85, %cst_43 {dimension_numbers = #tpu.dot_dimension_numbers<[1], [0], [0], [1], [0, 0, 1, 1], [], []>} : vector<8x8xbf16>, vector<8x384xbf16>, vector<8x384xf32> -> vector<8x384xf32>
    %87 = arith.addf %81, %86 : vector<8x384xf32>
    %c18_i32_44 = arith.constant 18 : i32
    %88 = tpu.dynamic_rotate %80 by %c18_i32_44 dim 1 : vector<8x384xf32>, i32 -> vector<8x384xf32>
    %c1_45 = arith.constant 1 : index
    %c0_46 = arith.constant 0 : index
    %c0_47 = arith.constant 0 : index
    %89 = vector.load %arg3[%c1_45, %c0_46, %c0_47] : memref<9x8x8xbf16, #tpu.memory_space<vmem>>, vector<1x8x8xbf16>
    %90 = vector.shape_cast %89 : vector<1x8x8xbf16> to vector<8x8xbf16>
    %91 = arith.truncf %88 : vector<8x384xf32> to vector<8x384xbf16>
    %cst_48 = arith.constant dense<0.000000e+00> : vector<8x384xf32>
    %92 = tpu.matmul %90, %91, %cst_48 {dimension_numbers = #tpu.dot_dimension_numbers<[1], [0], [0], [1], [0, 0, 1, 1], [], []>} : vector<8x8xbf16>, vector<8x384xbf16>, vector<8x384xf32> -> vector<8x384xf32>
    %93 = arith.addf %87, %92 : vector<8x384xf32>
    %c17_i32_49 = arith.constant 17 : i32
    %94 = tpu.dynamic_rotate %80 by %c17_i32_49 dim 1 : vector<8x384xf32>, i32 -> vector<8x384xf32>
    %c2_50 = arith.constant 2 : index
    %c0_51 = arith.constant 0 : index
    %c0_52 = arith.constant 0 : index
    %95 = vector.load %arg3[%c2_50, %c0_51, %c0_52] : memref<9x8x8xbf16, #tpu.memory_space<vmem>>, vector<1x8x8xbf16>
    %96 = vector.shape_cast %95 : vector<1x8x8xbf16> to vector<8x8xbf16>
    %97 = arith.truncf %94 : vector<8x384xf32> to vector<8x384xbf16>
    %cst_53 = arith.constant dense<0.000000e+00> : vector<8x384xf32>
    %98 = tpu.matmul %96, %97, %cst_53 {dimension_numbers = #tpu.dot_dimension_numbers<[1], [0], [0], [1], [0, 0, 1, 1], [], []>} : vector<8x8xbf16>, vector<8x384xbf16>, vector<8x384xf32> -> vector<8x384xf32>
    %99 = arith.addf %93, %98 : vector<8x384xf32>
    %c1_i32_54 = arith.constant 1 : i32
    %100 = tpu.dynamic_rotate %80 by %c1_i32_54 dim 1 : vector<8x384xf32>, i32 -> vector<8x384xf32>
    %c3_55 = arith.constant 3 : index
    %c0_56 = arith.constant 0 : index
    %c0_57 = arith.constant 0 : index
    %101 = vector.load %arg3[%c3_55, %c0_56, %c0_57] : memref<9x8x8xbf16, #tpu.memory_space<vmem>>, vector<1x8x8xbf16>
    %102 = vector.shape_cast %101 : vector<1x8x8xbf16> to vector<8x8xbf16>
    %103 = arith.truncf %100 : vector<8x384xf32> to vector<8x384xbf16>
    %cst_58 = arith.constant dense<0.000000e+00> : vector<8x384xf32>
    %104 = tpu.matmul %102, %103, %cst_58 {dimension_numbers = #tpu.dot_dimension_numbers<[1], [0], [0], [1], [0, 0, 1, 1], [], []>} : vector<8x8xbf16>, vector<8x384xbf16>, vector<8x384xf32> -> vector<8x384xf32>
    %105 = arith.addf %99, %104 : vector<8x384xf32>
    %c4_59 = arith.constant 4 : index
    %c0_60 = arith.constant 0 : index
    %c0_61 = arith.constant 0 : index
    %106 = vector.load %arg3[%c4_59, %c0_60, %c0_61] : memref<9x8x8xbf16, #tpu.memory_space<vmem>>, vector<1x8x8xbf16>
    %107 = vector.shape_cast %106 : vector<1x8x8xbf16> to vector<8x8xbf16>
    %108 = arith.truncf %80 : vector<8x384xf32> to vector<8x384xbf16>
    %cst_62 = arith.constant dense<0.000000e+00> : vector<8x384xf32>
    %109 = tpu.matmul %107, %108, %cst_62 {dimension_numbers = #tpu.dot_dimension_numbers<[1], [0], [0], [1], [0, 0, 1, 1], [], []>} : vector<8x8xbf16>, vector<8x384xbf16>, vector<8x384xf32> -> vector<8x384xf32>
    %110 = arith.addf %105, %109 : vector<8x384xf32>
    %c383_i32_63 = arith.constant 383 : i32
    %111 = tpu.dynamic_rotate %80 by %c383_i32_63 dim 1 : vector<8x384xf32>, i32 -> vector<8x384xf32>
    %c5_64 = arith.constant 5 : index
    %c0_65 = arith.constant 0 : index
    %c0_66 = arith.constant 0 : index
    %112 = vector.load %arg3[%c5_64, %c0_65, %c0_66] : memref<9x8x8xbf16, #tpu.memory_space<vmem>>, vector<1x8x8xbf16>
    %113 = vector.shape_cast %112 : vector<1x8x8xbf16> to vector<8x8xbf16>
    %114 = arith.truncf %111 : vector<8x384xf32> to vector<8x384xbf16>
    %cst_67 = arith.constant dense<0.000000e+00> : vector<8x384xf32>
    %115 = tpu.matmul %113, %114, %cst_67 {dimension_numbers = #tpu.dot_dimension_numbers<[1], [0], [0], [1], [0, 0, 1, 1], [], []>} : vector<8x8xbf16>, vector<8x384xbf16>, vector<8x384xf32> -> vector<8x384xf32>
    %116 = arith.addf %110, %115 : vector<8x384xf32>
    %c367_i32_68 = arith.constant 367 : i32
    %117 = tpu.dynamic_rotate %80 by %c367_i32_68 dim 1 : vector<8x384xf32>, i32 -> vector<8x384xf32>
    %c6_69 = arith.constant 6 : index
    %c0_70 = arith.constant 0 : index
    %c0_71 = arith.constant 0 : index
    %118 = vector.load %arg3[%c6_69, %c0_70, %c0_71] : memref<9x8x8xbf16, #tpu.memory_space<vmem>>, vector<1x8x8xbf16>
    %119 = vector.shape_cast %118 : vector<1x8x8xbf16> to vector<8x8xbf16>
    %120 = arith.truncf %117 : vector<8x384xf32> to vector<8x384xbf16>
    %cst_72 = arith.constant dense<0.000000e+00> : vector<8x384xf32>
    %121 = tpu.matmul %119, %120, %cst_72 {dimension_numbers = #tpu.dot_dimension_numbers<[1], [0], [0], [1], [0, 0, 1, 1], [], []>} : vector<8x8xbf16>, vector<8x384xbf16>, vector<8x384xf32> -> vector<8x384xf32>
    %122 = arith.addf %116, %121 : vector<8x384xf32>
    %c366_i32_73 = arith.constant 366 : i32
    %123 = tpu.dynamic_rotate %80 by %c366_i32_73 dim 1 : vector<8x384xf32>, i32 -> vector<8x384xf32>
    %c7_74 = arith.constant 7 : index
    %c0_75 = arith.constant 0 : index
    %c0_76 = arith.constant 0 : index
    %124 = vector.load %arg3[%c7_74, %c0_75, %c0_76] : memref<9x8x8xbf16, #tpu.memory_space<vmem>>, vector<1x8x8xbf16>
    %125 = vector.shape_cast %124 : vector<1x8x8xbf16> to vector<8x8xbf16>
    %126 = arith.truncf %123 : vector<8x384xf32> to vector<8x384xbf16>
    %cst_77 = arith.constant dense<0.000000e+00> : vector<8x384xf32>
    %127 = tpu.matmul %125, %126, %cst_77 {dimension_numbers = #tpu.dot_dimension_numbers<[1], [0], [0], [1], [0, 0, 1, 1], [], []>} : vector<8x8xbf16>, vector<8x384xbf16>, vector<8x384xf32> -> vector<8x384xf32>
    %128 = arith.addf %122, %127 : vector<8x384xf32>
    %c365_i32_78 = arith.constant 365 : i32
    %129 = tpu.dynamic_rotate %80 by %c365_i32_78 dim 1 : vector<8x384xf32>, i32 -> vector<8x384xf32>
    %c8_79 = arith.constant 8 : index
    %c0_80 = arith.constant 0 : index
    %c0_81 = arith.constant 0 : index
    %130 = vector.load %arg3[%c8_79, %c0_80, %c0_81] : memref<9x8x8xbf16, #tpu.memory_space<vmem>>, vector<1x8x8xbf16>
    %131 = vector.shape_cast %130 : vector<1x8x8xbf16> to vector<8x8xbf16>
    %132 = arith.truncf %129 : vector<8x384xf32> to vector<8x384xbf16>
    %cst_82 = arith.constant dense<0.000000e+00> : vector<8x384xf32>
    %133 = tpu.matmul %131, %132, %cst_82 {dimension_numbers = #tpu.dot_dimension_numbers<[1], [0], [0], [1], [0, 0, 1, 1], [], []>} : vector<8x8xbf16>, vector<8x384xbf16>, vector<8x384xf32> -> vector<8x384xf32>
    %134 = arith.addf %128, %133 : vector<8x384xf32>
    %135 = vector.broadcast %2 : vector<1x384xf32> to vector<8x384xf32>
    %136 = arith.mulf %134, %135 : vector<8x384xf32>
    %cst_83 = arith.constant dense<0.000000e+00> : vector<8xf32>
    %137 = vector.multi_reduction <add>, %136, %cst_83 [1] : vector<8x384xf32> to vector<8xf32>
    %138 = vector.shape_cast %137 : vector<8xf32> to vector<8x1xf32>
    %cst_84 = arith.constant 3.906250e-03 : f32
    %139 = vector.broadcast %cst_84 : f32 to vector<8x1xf32>
    %140 = arith.mulf %138, %139 : vector<8x1xf32>
    %141 = arith.mulf %136, %134 : vector<8x384xf32>
    %cst_85 = arith.constant dense<0.000000e+00> : vector<8xf32>
    %142 = vector.multi_reduction <add>, %141, %cst_85 [1] : vector<8x384xf32> to vector<8xf32>
    %143 = vector.shape_cast %142 : vector<8xf32> to vector<8x1xf32>
    %cst_86 = arith.constant 3.906250e-03 : f32
    %144 = vector.broadcast %cst_86 : f32 to vector<8x1xf32>
    %145 = arith.mulf %143, %144 : vector<8x1xf32>
    %146 = arith.mulf %140, %140 : vector<8x1xf32>
    %147 = arith.subf %145, %146 : vector<8x1xf32>
    %148 = vector.broadcast %140 : vector<8x1xf32> to vector<8x384xf32>
    %149 = arith.subf %134, %148 : vector<8x384xf32>
    %cst_87 = arith.constant 9.99999974E-6 : f32
    %150 = vector.broadcast %cst_87 : f32 to vector<8x1xf32>
    %151 = arith.addf %147, %150 : vector<8x1xf32>
    %152 = math.rsqrt %151 : vector<8x1xf32>
    %153 = vector.broadcast %152 : vector<8x1xf32> to vector<8x384xf32>
    %154 = arith.mulf %149, %153 : vector<8x384xf32>
    %cst_88 = arith.constant 0.000000e+00 : f32
    %155 = vector.broadcast %cst_88 : f32 to vector<8x384xf32>
    %156 = arith.maximumf %154, %155 : vector<8x384xf32>
    %157 = vector.broadcast %2 : vector<1x384xf32> to vector<8x384xf32>
    %158 = arith.mulf %156, %157 : vector<8x384xf32>
    %c0_89 = arith.constant 0 : index
    %c0_90 = arith.constant 0 : index
    %c0_91 = arith.constant 0 : index
    %159 = vector.load %arg5[%c0_89, %c0_90, %c0_91] : memref<1x8x384xf32, #tpu.memory_space<vmem>>, vector<1x8x384xf32>
    %160 = vector.shape_cast %159 : vector<1x8x384xf32> to vector<8x384xf32>
    %161 = vector.shape_cast %158 : vector<8x384xf32> to vector<1x8x384xf32>
    tpu.vector_store %arg5[%c0_89, %c0_90, %c0_91], %161 {strides = array<i32>} : memref<1x8x384xf32, #tpu.memory_space<vmem>>, vector<1x8x384xf32>,
    return
  }
  func.func @transform_0(%arg0: i32) -> (i32, i32, i32) {
    %c0_i32 = arith.constant 0 : i32
    %c0_i32_0 = arith.constant 0 : i32
    %c0_i32_1 = arith.constant 0 : i32
    return %arg0, %c0_i32, %c0_i32_0 : i32, i32, i32
  }
  func.func @transform_1(%arg0: i32) -> (i32, i32, i32) {
    %c0_i32 = arith.constant 0 : i32
    %c0_i32_0 = arith.constant 0 : i32
    %c0_i32_1 = arith.constant 0 : i32
    %c0_i32_2 = arith.constant 0 : i32
    return %c0_i32, %c0_i32_0, %c0_i32_1 : i32, i32, i32
  }
  func.func @transform_2(%arg0: i32) -> (i32, i32, i32) {
    %c0_i32 = arith.constant 0 : i32
    %c0_i32_0 = arith.constant 0 : i32
    %c0_i32_1 = arith.constant 0 : i32
    %c0_i32_2 = arith.constant 0 : i32
    return %c0_i32, %c0_i32_0, %c0_i32_1 : i32, i32, i32
  }
  func.func @transform_3(%arg0: i32) -> (i32, i32) {
    %c0_i32 = arith.constant 0 : i32
    %c0_i32_0 = arith.constant 0 : i32
    %c0_i32_1 = arith.constant 0 : i32
    return %c0_i32, %c0_i32_0 : i32, i32
  }
  func.func @transform_4(%arg0: i32) -> (i32, i32, i32) {
    %c0_i32 = arith.constant 0 : i32
    %c0_i32_0 = arith.constant 0 : i32
    %c0_i32_1 = arith.constant 0 : i32
    return %arg0, %c0_i32, %c0_i32_0 : i32, i32, i32
  }
}

</mosaic_0001>

<bundles_post_ra>
// kernel: tpu_custom_call.1
= control target key start
LH: loop header
LB: loop body
LE: loop exit
PB: predicated region body
PF: predicated region fallthrough
CT: control target
= control target key end

     0   :  { %9 = vsyncpa [#allocation3], 0  ;;  %s3434_s0 = inlined_call_operand.vmem [shape: f32[2,4,384], index: 0, kind: input, shape index: {}]   ;;  %s3435_s1 = inlined_call_operand.vmem [shape: bf16[9,8,4], index: 1, kind: input, shape index: {}]   ;;  %s3436_s2 = inlined_call_operand.vmem [shape: bf16[9,8,8], index: 2, kind: input, shape index: {}]   ;;  %s3437_s3 = inlined_call_operand.vmem [shape: f32[1,384], index: 3, kind: input, shape index: {}]   ;;  %s3438_s4 = inlined_call_operand.hbm [shape: f32[2,8,384], index: 4, kind: output, shape index: {}]  }
   0x1   :  { %11 = vsyncpa [#allocation3 + $0x1], 0  ;;  %s2911_s15 = smov 0   ;;  %s2913_s16 = smov 0  }
   0x2   :  { %s2915_s17 = smov 0   ;;  %s2917_s18 = smov 0  }
   0x3 LB: > { %s2932_s19 = sadd.s32 4294967295, %s2872_s18   ;;  %s2322_s20 = sadd.s32 4294967294, %s2872_s18   ;;  %s2872_s18 = sphi %s2917_s18, %s3444_s18   ;;  %s2868_s17 = sphi %s2915_s17, %s3443_s17   ;;  %s2864_s16 = sphi %s2913_s16, %s3442_s16   ;;  %s2860_s15 = sphi %s2911_s15, %s3441_s15  }
   0x4   : > { %s2936_s21 = sadd.s32 1, %s2872_s18   ;;  %s113_s22 = sadd.s32 1, %s2868_s17 }
   0x5   : > { %s110_s23 = ssub.s32 %s2872_s18, %s2936_s21  ;;  %p123_p0 = scmp.ne.s32.totalorder %s2868_s17, %s2864_s16 }
   0x6   : > { %p111_p1 = scmp.eq.s32.totalorder %s110_s23, 0  ;;  %p124_p2 = scmp.eq.s32.totalorder %s2932_s19, 1 }
   0x7   : > { %p129_p3 = scmp.ne.s32.totalorder %s2864_s16, %s2860_s15  ;;  %p130_p4 = scmp.eq.s32.totalorder %s2322_s20, 1 }
   0x8   : > { %s2947_s24 = scalar_select %p111_p1, %s2868_s17, %s113_s22  }
   0x9   : > { %p2949_p5 = por %p124_p2, %p123_p0  ;;  %p2953_p6 = por %p130_p4, %p129_p3 }
   0xa   : > { %p2325_p7 = scmp.ge.s32.totalorder %s2872_s18, 1  ;;  %p165_p8 = scmp.lt.s32.totalorder %s2872_s18, 3 }
   0xc   : > { %p166_p9 = pnand %p2325_p7, %p165_p8 }
   0xd   : > { %p191_p10 = scmp.lt.s32.totalorder (!%p166_p9), %s2932_s19, 1  ;;  %v2874_v0 = vmov (!%p166_p9), 0.0   ;;  %v2875_v3 = vmov (!%p166_p9), 0   ;;  %vm2876_vm0 = vmmov (!%p166_p9), 0   ;;  %s2877_s6 = smov (!%p166_p9), 18   ;;  %v209_v6 = vlaneseq (!%p166_p9) }
   0xe   : > { %169 = sbr.rel (%p166_p9) target bundleno = 1262 (0x4ee), region = 36  ;;  %2436 = vmatprep.subr.bf16.mxu1 (!%p166_p9), %v2874_v0  ;;  %280 = vmatprep.mubr.bf16.mxu0 (!%p166_p9), %v2875_v3  ;;  %s2878_s7 = smov (!%p166_p9), 19   ;;  %vm238_vm3 = vcmask (!%p166_p9), 1041408   ;;  %v2327_v31 = vld [vmem:[%s3435_s1 + $0x4] sm:$0xf] (!%p166_p9)  ;;  %vm234_vm5 = vcmask (!%p166_p9), 31744  }
   0xf   : > { %2438 = vmatprep.mubr.msk.bf16.mxu1 (!%p166_p9), %vm2876_vm0, %v2874_v0  ;;  %s2879_s8 = smov (!%p166_p9), 17   ;;  %s2880_s9 = smov (!%p166_p9), 1   ;;  %v3003_v7 = vand.u32 (!%p166_p9), 127, %v209_v6  ;;  %v215_v47 = vld [vmem:[%s3435_s1] sm:$0xf] (!%p166_p9)  ;;  %vm1268_vm11 = vcmask (!%p166_p9), 1043456  }
  0x10   : > { %s2881_s10 = smov (!%p166_p9), 127   ;;  %s2882_s11 = smov (!%p166_p9), 111   ;;  %v2334_v56 = vld [vmem:[%s3435_s1 + $0x8] sm:$0xf] (!%p166_p9)  ;;  %vm1264_vm12 = vcmask (!%p166_p9), 64512  }
  0x11   : > { %s2883_s12 = smov (!%p166_p9), 110   ;;  %s2884_s13 = smov (!%p166_p9), 109   ;;  %vm225_vm1 = vcmp.lt.s32.totalorder (!%p166_p9), %v3003_v7, 18  ;;  %vm211_vm2 = vcmp.lt.s32.totalorder (!%p166_p9), %v3003_v7, 19  ;;  %vm428_vm4 = vcmp.lt.s32.totalorder (!%p166_p9), %v3003_v7, 17  ;;  %vm539_vm6 = vcmp.lt.s32.totalorder (!%p166_p9), %v3003_v7, 1 }
  0x12   : > { %vm751_vm7 = vcmp.lt.s32.totalorder (!%p166_p9), %v3003_v7, 127  ;;  %vm862_vm8 = vcmp.lt.s32.totalorder (!%p166_p9), %v3003_v7, 111  ;;  %vm973_vm9 = vcmp.lt.s32.totalorder (!%p166_p9), %v3003_v7, 110  ;;  %vm1084_vm10 = vcmp.lt.s32.totalorder (!%p166_p9), %v3003_v7, 109  ;;  %v2393_v7 = vld [vmem:[%s3436_s2 + $0x20] sm:$0xf] (!%p166_p9) }
  0x15   : > { %s192_s27 = scalar_select %p191_p10, %s2932_s19, 1 }
  0x17   : > { %s2673_s28 = smul.u32 12, %s192_s27  ;;  %s2885_s27 = smov [#allocation2]  }
  0x19   : > { %s195_s5 = scalar_lea.vmem %s3434_s0, %s2673_s28  ;;  %s2814_s28 = sshll.u32 %s2885_s27, 4  ;;  %s2815_s28 = int_to_ptr.vmem [resolvable:$false] %s2814_s28 }
  0x1a   : > { %v2965_v1 = vld [vmem:[%s195_s5] sm:$0xff]  ;;  %v2978_v5 = vld [vmem:[%s195_s5 + $0x8] sm:$0xf]  ;;  %s2816_s29 = scalar_lea.vmem %s2815_s28, 768 }
  0x1b   : > { %v2969_v2 = vcombine.high %v2965_v1, %v2965_v1  ;;  %v646_v63 = vpack.c.bf16 %v2965_v1, %v2965_v1 }
  0x1d   : > { %v2725_v4 = vpack.i.bf16 %v2969_v2, %v2965_v1  ;;  %v647_v59 = vpack.c.bf16 %v2969_v2, %v2969_v2  ;;  %v648_v2 = vpack.c.bf16 %v2978_v5, %v2978_v5 }
  0x1f   : > { %2726 = vrot.lane.b32.xlu0 %v2725_v4, %s2877_s6  ;;  %2731 = vrot.lane.b32.xlu1 %v2725_v4, %s2878_s7 }
  0x23   : > { %223 = vrot.lane.b32.xlu0 %v2978_v5, %s2877_s6  ;;  %207 = vrot.lane.b32.xlu1 %v2978_v5, %s2878_s7 }
  0x27   : > { %2736 = vrot.lane.b32.xlu0 %v2725_v4, %s2879_s8  ;;  %426 = vrot.lane.b32.xlu1 %v2978_v5, %s2879_s8 }
  0x2b   : > { %2741 = vrot.lane.b32.xlu0 %v2725_v4, %s2880_s9  ;;  %537 = vrot.lane.b32.xlu1 %v2978_v5, %s2880_s9 }
  0x2f   : > { %2746 = vrot.lane.b32.xlu0 %v2725_v4, %s2881_s10  ;;  %749 = vrot.lane.b32.xlu1 %v2978_v5, %s2881_s10 }
  0x33   : > { %2751 = vrot.lane.b32.xlu0 %v2725_v4, %s2882_s11  ;;  %860 = vrot.lane.b32.xlu1 %v2978_v5, %s2882_s11 }
  0x37   : > { %2756 = vrot.lane.b32.xlu0 %v2725_v4, %s2883_s12  ;;  %971 = vrot.lane.b32.xlu1 %v2978_v5, %s2883_s12 }
  0x3b   : > { %2761 = vrot.lane.b32.xlu0 %v2725_v4, %s2884_s13  ;;  %1082 = vrot.lane.b32.xlu1 %v2978_v5, %s2884_s13 }
  0x91   : > { %v2727_v8 = vpop.permute.xlu0 %2726  ;;  %v2732_v9 = vpop.permute.xlu1 %2731 }
  0x92   : > { %v2729_v10 = vunpack.i.h.bf16 %v2727_v8  ;;  %v2728_v11 = vunpack.i.l.bf16 %v2727_v8  ;;  %v2734_v12 = vunpack.i.h.bf16 %v2732_v9  ;;  %v2733_v13 = vunpack.i.l.bf16 %v2732_v9  ;;  %v2338_v8 = vld [vmem:[%s3435_s1 + $0xc] sm:$0xf] }
  0x93   : > { %v653_v9 = vsel %vm238_vm3, %v646_v63, 0 }
  0x94   : > { %v213_v14 = vsel %vm211_vm2, %v2733_v13, %v2734_v12  ;;  %v227_v15 = vsel %vm225_vm1, %v2728_v11, %v2729_v10 }
  0x95   : > { %v224_v16 = vpop.permute.xlu0 %223  ;;  %v217_v17 = vpack.c.bf16 %v213_v14, %v213_v14  ;;  %v232_v18 = vpack.c.bf16 %v227_v15, %v227_v15  ;;  %v208_v19 = vpop.permute.xlu1 %207 }
  0x96   : > { %v226_v20 = vsel %vm225_vm1, %v2729_v10, %v224_v16  ;;  %v228_v21 = vsel %vm225_vm1, %v224_v16, %v2728_v11  ;;  %v212_v22 = vsel %vm211_vm2, %v2734_v12, %v208_v19  ;;  %v214_v23 = vsel %vm211_vm2, %v208_v19, %v2733_v13  ;;  %v2342_v19 = vld [vmem:[%s3435_s1 + $0x10] sm:$0xf] }
  0x97   : > { %v231_v24 = vpack.c.bf16 %v228_v21, %v228_v21  ;;  %v233_v25 = vpack.c.bf16 %v226_v20, %v226_v20  ;;  %2328 = vmatprep.subr.msk.bf16.mxu0 %vm238_vm3, %v232_v18  ;;  %v216_v26 = vpack.c.bf16 %v214_v23, %v214_v23  ;;  %v218_v27 = vpack.c.bf16 %v212_v22, %v212_v22 }
  0x98   : > { %v659_v10 = vsel %vm238_vm3, %v648_v2, 0 }
  0x99   : > { %v240_v28 = vsel %vm238_vm3, %v231_v24, 0  ;;  %v246_v29 = vsel %vm238_vm3, %v233_v25, 0  ;;  %v2737_v30 = vpop.permute.xlu0 %2736  ;;  %v333_v34 = vsel %vm238_vm3, %v216_v26, 0  ;;  %v339_v35 = vsel %vm238_vm3, %v218_v27, 0  ;;  %v427_v38 = vpop.permute.xlu1 %426 }
  0x9a   : > { %249 = vmatpush1.bf16.msra.mxu0 %v240_v28  ;;  %2437 = vmatpush3.bf16.msra.mxu1 %v246_v29  ;;  %v2739_v32 = vunpack.i.h.bf16 %v2737_v30  ;;  %v2738_v33 = vunpack.i.l.bf16 %v2737_v30 }
  0x9b   : > { %2331 = vmatprep.subr.msk.bf16.mxu0 %vm238_vm3, %v217_v17  ;;  %2442 = vmatprep.subr.bf16.mxu1 %v2874_v0 }
  0x9c   : > { %v430_v36 = vsel %vm428_vm4, %v2738_v33, %v2739_v32  ;;  %v429_v40 = vsel %vm428_vm4, %v2739_v32, %v427_v38  ;;  %v431_v41 = vsel %vm428_vm4, %v427_v38, %v2738_v33  ;;  %v2346_v32 = vld [vmem:[%s3435_s1 + $0x14] sm:$0xf] }
  0x9d   : > { %2329 = vmatmul.mubr.msk.bf16.vlgmr.msra.gmra.mrb[0].mxu0 %vm234_vm5, %v2327_v31  ;;  %2439 = vmatmul.mubr.msk.bf16.vlgmr.msra.gmra.mrb[0].mxu1 %vm234_vm5, %v2327_v31  ;;  %v435_v37 = vpack.c.bf16 %v430_v36, %v430_v36  ;;  %v2742_v39 = vpop.permute.xlu0 %2741  ;;  %v434_v44 = vpack.c.bf16 %v431_v41, %v431_v41  ;;  %v436_v45 = vpack.c.bf16 %v429_v40, %v429_v40  ;;  %v538_v51 = vpop.permute.xlu1 %537 }
  0x9e   : > { %342 = vmatpush1.bf16.msra.mxu0 %v333_v34  ;;  %2443 = vmatpush3.bf16.msra.mxu1 %v339_v35  ;;  %v2744_v42 = vunpack.i.h.bf16 %v2742_v39  ;;  %v2743_v43 = vunpack.i.l.bf16 %v2742_v39 }
  0x9f   : > { %373 = vmatprep.mubr.bf16.mxu0 %v2875_v3  ;;  %2444 = vmatprep.mubr.msk.bf16.mxu1 %vm2876_vm0, %v2874_v0  ;;  %v441_v48 = vsel %vm238_vm3, %v434_v44, 0  ;;  %v447_v49 = vsel %vm238_vm3, %v436_v45, 0  ;;  %v2350_v45 = vld [vmem:[%s3435_s1 + $0x18] sm:$0xf] }
  0xa0   : > { %2335 = vmatprep.subr.msk.bf16.mxu0 %vm238_vm3, %v435_v37  ;;  %2448 = vmatprep.subr.bf16.mxu1 %v2874_v0  ;;  %v541_v46 = vsel %vm539_vm6, %v2743_v43, %v2744_v42  ;;  %v540_v52 = vsel %vm539_vm6, %v2744_v42, %v538_v51  ;;  %v542_v53 = vsel %vm539_vm6, %v538_v51, %v2743_v43 }
  0xa1   : > { %v546_v50 = vpack.c.bf16 %v541_v46, %v541_v46  ;;  %v545_v54 = vpack.c.bf16 %v542_v53, %v542_v53  ;;  %v547_v55 = vpack.c.bf16 %v540_v52, %v540_v52  ;;  %v2747_v60 = vpop.permute.xlu0 %2746  ;;  %v750_v62 = vpop.permute.xlu1 %749 }
  0xa2   : > { %v2749_v61 = vunpack.i.h.bf16 %v2747_v60  ;;  %v2748_v11 = vunpack.i.l.bf16 %v2747_v60  ;;  %v199_v60 = vld [vmem:[%s3437_s3] sm:$0x7] }
  0xa3   : > { %v552_v57 = vsel %vm238_vm3, %v545_v54, 0  ;;  %v558_v58 = vsel %vm238_vm3, %v547_v55, 0  ;;  %v2354_v54 = vld [vmem:[%s3435_s1 + $0x1c] sm:$0xf] }
  0xa4   : > { %v752_v4 = vsel %vm751_vm7, %v2749_v61, %v750_v62  ;;  %v754_v5 = vsel %vm751_vm7, %v750_v62, %v2748_v11  ;;  %v753_v13 = vsel %vm751_vm7, %v2748_v11, %v2749_v61 }
  0xa5   : > { %v758_v12 = vpack.c.bf16 %v752_v4, %v752_v4  ;;  %v2752_v1 = vpop.permute.xlu0 %2751  ;;  %v861_v15 = vpop.permute.xlu1 %860  ;;  %v759_v16 = vpack.c.bf16 %v754_v5, %v754_v5  ;;  %v757_v17 = vpack.c.bf16 %v753_v13, %v753_v13 }
  0xa6   : > { %v2754_v14 = vunpack.i.h.bf16 %v2752_v1  ;;  %v2753_v22 = vunpack.i.l.bf16 %v2752_v1 }
  0xa7   : > { %v764_v20 = vsel %vm238_vm3, %v757_v17, 0  ;;  %v770_v21 = vsel %vm238_vm3, %v759_v16, 0 }
  0xa8   : > { %v863_v18 = vsel %vm862_vm8, %v2754_v14, %v861_v15  ;;  %v865_v25 = vsel %vm862_vm8, %v861_v15, %v2753_v22  ;;  %v864_v26 = vsel %vm862_vm8, %v2753_v22, %v2754_v14 }
  0xa9   : > { %2332 = vmatmul.mubr.msk.bf16.vlgmr.msra.gmra.mrb[0].mxu0 %vm234_vm5, %v215_v47  ;;  %2445 = vmatmul.mubr.msk.bf16.vlgmr.msra.gmra.mrb[0].mxu1 %vm234_vm5, %v215_v47  ;;  %v869_v23 = vpack.c.bf16 %v863_v18, %v863_v18  ;;  %v2757_v24 = vpop.permute.xlu0 %2756  ;;  %v972_v28 = vpop.permute.xlu1 %971  ;;  %v870_v29 = vpack.c.bf16 %v865_v25, %v865_v25  ;;  %v868_v30 = vpack.c.bf16 %v864_v26, %v864_v26 }
  0xaa   : > { %450 = vmatpush1.bf16.msra.mxu0 %v441_v48  ;;  %2449 = vmatpush3.bf16.msra.mxu1 %v447_v49  ;;  %v2759_v27 = vunpack.i.h.bf16 %v2757_v24  ;;  %v2758_v35 = vunpack.i.l.bf16 %v2757_v24 }
  0xab   : > { %481 = vmatprep.mubr.bf16.mxu0 %v2875_v3  ;;  %2450 = vmatprep.mubr.msk.bf16.mxu1 %vm2876_vm0, %v2874_v0  ;;  %v875_v33 = vsel %vm238_vm3, %v868_v30, 0  ;;  %v881_v34 = vsel %vm238_vm3, %v870_v29, 0 }
  0xac   : > { %2339 = vmatprep.subr.msk.bf16.mxu0 %vm238_vm3, %v546_v50  ;;  %2454 = vmatprep.subr.bf16.mxu1 %v2874_v0  ;;  %v974_v31 = vsel %vm973_vm9, %v2759_v27, %v972_v28  ;;  %v976_v38 = vsel %vm973_vm9, %v972_v28, %v2758_v35  ;;  %v975_v39 = vsel %vm973_vm9, %v2758_v35, %v2759_v27 }
  0xad   : > { %v980_v36 = vpack.c.bf16 %v974_v31, %v974_v31  ;;  %v2762_v37 = vpop.permute.xlu0 %2761  ;;  %v1083_v41 = vpop.permute.xlu1 %1082  ;;  %v981_v42 = vpack.c.bf16 %v976_v38, %v976_v38  ;;  %v979_v43 = vpack.c.bf16 %v975_v39, %v975_v39 }
  0xae   : > { %v2764_v40 = vunpack.i.h.bf16 %v2762_v37  ;;  %v2763_v48 = vunpack.i.l.bf16 %v2762_v37 }
  0xaf   : > { %v986_v46 = vsel %vm238_vm3, %v979_v43, 0  ;;  %v992_v47 = vsel %vm238_vm3, %v981_v42, 0 }
  0xb0   : > { %v1085_v44 = vsel %vm1084_vm10, %v2764_v40, %v1083_v41  ;;  %v1087_v50 = vsel %vm1084_vm10, %v1083_v41, %v2763_v48  ;;  %v1086_v51 = vsel %vm1084_vm10, %v2763_v48, %v2764_v40 }
  0xb1   : > { %v1091_v49 = vpack.c.bf16 %v1085_v44, %v1085_v44  ;;  %v1092_v52 = vpack.c.bf16 %v1087_v50, %v1087_v50  ;;  %v1090_v53 = vpack.c.bf16 %v1086_v51, %v1086_v51 }
  0xb3   : > { %v1097_v55 = vsel %vm238_vm3, %v1090_v53, 0 }
  0xb5   : > { %2336 = vmatmul.mubr.msk.bf16.vlgmr.msra.gmra.mrb[0].mxu0 %vm234_vm5, %v2334_v56  ;;  %2451 = vmatmul.mubr.msk.bf16.vlgmr.msra.gmra.mrb[0].mxu1 %vm234_vm5, %v2334_v56  ;;  %v1103_v56 = vsel %vm238_vm3, %v1092_v52, 0 }
  0xb6   : > { %561 = vmatpush1.bf16.msra.mxu0 %v552_v57  ;;  %2455 = vmatpush3.bf16.msra.mxu1 %v558_v58  ;;  %v2358_v57 = vld [vmem:[%s3435_s1 + $0x20] sm:$0xf]  ;;  %v1191_v58 = vshrl.u32 %v209_v6, 7 }
  0xb7   : > { %592 = vmatprep.mubr.bf16.mxu0 %v2875_v3  ;;  %2456 = vmatprep.mubr.msk.bf16.mxu1 %vm2876_vm0, %v2874_v0 }
  0xb8   : > { %2343 = vmatprep.subr.msk.bf16.mxu0 %vm238_vm3, %v647_v59  ;;  %2460 = vmatprep.subr.bf16.mxu1 %v2874_v0  ;;  %v1192_v59 = vsub.s32 0, %v1191_v58  ;;  %v1196_v61 = vsub.s32 1, %v1191_v58  ;;  %v1200_v62 = vsub.s32 2, %v1191_v58 }
  0xba   : > { %v3179_v63 = vrot.slane %v199_v60, %v1192_v59  ;;  %v3181_v2 = vrot.slane %v199_v60, %v1196_v61  ;;  %v3183_v4 = vrot.slane %v199_v60, %v1200_v62  ;;  %v2362_v61 = vld [vmem:[%s3436_s2 + $0x4] sm:$0xf] }
  0xc1   : > { %2340 = vmatmul.mubr.msk.bf16.vlgmr.msra.gmra.mrb[0].mxu0 %vm234_vm5, %v2338_v8  ;;  %2457 = vmatmul.mubr.msk.bf16.vlgmr.msra.gmra.mrb[0].mxu1 %vm234_vm5, %v2338_v8 }
  0xc2   : > { %662 = vmatpush1.bf16.msra.mxu0 %v653_v9  ;;  %2461 = vmatpush3.bf16.msra.mxu1 %v659_v10 }
  0xc3   : > { %693 = vmatprep.mubr.bf16.mxu0 %v2875_v3  ;;  %2462 = vmatprep.mubr.msk.bf16.mxu1 %vm2876_vm0, %v2874_v0 }
  0xc4   : > { %2347 = vmatprep.subr.msk.bf16.mxu0 %vm238_vm3, %v758_v12  ;;  %2466 = vmatprep.subr.bf16.mxu1 %v2874_v0 }
  0xcd   : > { %2344 = vmatmul.mubr.msk.bf16.vlgmr.msra.gmra.mrb[0].mxu0 %vm234_vm5, %v2342_v19  ;;  %2463 = vmatmul.mubr.msk.bf16.vlgmr.msra.gmra.mrb[0].mxu1 %vm234_vm5, %v2342_v19 }
  0xce   : > { %773 = vmatpush1.bf16.msra.mxu0 %v764_v20  ;;  %2467 = vmatpush3.bf16.msra.mxu1 %v770_v21 }
  0xcf   : > { %804 = vmatprep.mubr.bf16.mxu0 %v2875_v3  ;;  %2468 = vmatprep.mubr.msk.bf16.mxu1 %vm2876_vm0, %v2874_v0 }
  0xd0   : > { %2351 = vmatprep.subr.msk.bf16.mxu0 %vm238_vm3, %v869_v23  ;;  %2472 = vmatprep.subr.bf16.mxu1 %v2874_v0 }
  0xd9   : > { %2348 = vmatmul.mubr.msk.bf16.vlgmr.msra.gmra.mrb[0].mxu0 %vm234_vm5, %v2346_v32  ;;  %2469 = vmatmul.mubr.msk.bf16.vlgmr.msra.gmra.mrb[0].mxu1 %vm234_vm5, %v2346_v32 }
  0xda   : > { %884 = vmatpush1.bf16.msra.mxu0 %v875_v33  ;;  %2473 = vmatpush3.bf16.msra.mxu1 %v881_v34 }
  0xdb   : > { %915 = vmatprep.mubr.bf16.mxu0 %v2875_v3  ;;  %2474 = vmatprep.mubr.msk.bf16.mxu1 %vm2876_vm0, %v2874_v0 }
  0xdc   : > { %2355 = vmatprep.subr.msk.bf16.mxu0 %vm238_vm3, %v980_v36  ;;  %2478 = vmatprep.subr.bf16.mxu1 %v2874_v0 }
  0xe5   : > { %2352 = vmatmul.mubr.msk.bf16.vlgmr.msra.gmra.mrb[0].mxu0 %vm234_vm5, %v2350_v45  ;;  %2475 = vmatmul.mubr.msk.bf16.vlgmr.msra.gmra.mrb[0].mxu1 %vm234_vm5, %v2350_v45 }
  0xe6   : > { %995 = vmatpush1.bf16.msra.mxu0 %v986_v46  ;;  %2479 = vmatpush3.bf16.msra.mxu1 %v992_v47 }
  0xe7   : > { %1026 = vmatprep.mubr.bf16.mxu0 %v2875_v3  ;;  %2480 = vmatprep.mubr.msk.bf16.mxu1 %vm2876_vm0, %v2874_v0 }
  0xe8   : > { %2359 = vmatprep.subr.msk.bf16.mxu0 %vm238_vm3, %v1091_v49  ;;  %2484 = vmatprep.subr.bf16.mxu1 %v2874_v0 }
  0xf1   : > { %2356 = vmatmul.mubr.msk.bf16.vlgmr.msra.gmra.mrb[0].mxu0 %vm234_vm5, %v2354_v54  ;;  %2481 = vmatmul.mubr.msk.bf16.vlgmr.msra.gmra.mrb[0].mxu1 %vm234_vm5, %v2354_v54 }
  0xf2   : > { %1106 = vmatpush1.bf16.msra.mxu0 %v1097_v55  ;;  %2485 = vmatpush3.bf16.msra.mxu1 %v1103_v56 }
  0xf3   : > { %1137 = vmatprep.mubr.bf16.mxu0 %v2875_v3  ;;  %2486 = vmatprep.mubr.msk.bf16.mxu1 %vm2876_vm0, %v2874_v0 }
  0xf4   : > { %2490 = vmatprep.subr.bf16.mxu1 %v2874_v0 }
  0xfd   : > { %2360 = vmatmul.mubr.msk.bf16.vlgmr.msra.gmra.mrb[0].mxu0 %vm234_vm5, %v2358_v57  ;;  %2487 = vmatmul.mubr.msk.bf16.vlgmr.msra.gmra.mrb[0].mxu1 %vm234_vm5, %v2358_v57 }
  0xfe   : > { %1310 = vmatprep.mubr.bf16.mxu0 %v2875_v3  ;;  %2492 = vmatprep.mubr.msk.bf16.mxu1 %vm2876_vm0, %v2874_v0 }
 0x1d0   : > { %v1139_v8 = vpop.f32.mrb[0].mxu0  ;;  %v1180_v9 = vpop.f32.mrb[0].mxu1 }
 0x1d1   : > { %v1205_v10 = vmul.f32 %v3179_v63, %v1139_v8  ;;  %v1141_v11 = vpop.f32.mrb[1].mxu0  ;;  %v2488_v12 = vpop.f32.mrb[1].mxu1  ;;  %v1207_v13 = vmul.f32 %v3183_v4, %v1180_v9 }
 0x1d2   : > { %v1206_v6 = vmul.f32 %v3181_v2, %v1141_v11  ;;  %v1143_v1 = vpop.f32.mrb[2].mxu0  ;;  %v1183_v5 = vpop.f32.mrb[2].mxu1 }
 0x1d3   : > { %v1213_v14 = vmul.f32 %v1205_v10, %v1139_v8  ;;  %v1144_v15 = vpop.f32.mrb[3].mxu0  ;;  %v2489_v16 = vpop.f32.mrb[3].mxu1  ;;  %v1215_v20 = vmul.f32 %v1207_v13, %v1180_v9 }
 0x1d4   : > { %v1214_v17 = vmul.f32 %v1206_v6, %v1141_v11  ;;  %v1208_v18 = vadd.f32 %v1206_v6, %v1205_v10 }
 0x1d6   : > { %v1209_v19 = vadd.f32 %v1208_v18, %v1207_v13  ;;  %v1216_v21 = vadd.f32 %v1214_v17, %v1213_v14 }
 0x1d8   : > { %1210 = vadd.xlane.f32.xlu0 %v1209_v19  ;;  %v1217_v22 = vadd.f32 %v1216_v21, %v1215_v20 }
 0x1da   : > { %1218 = vadd.xlane.f32.xlu1 %v1217_v22 }
 0x265   : > { %v1211_v23 = vpop.xlane.xlu0 %1210 }
 0x266   : > { %v1212_v24 = vmul.f32 0.00390625, %v1211_v23 }
 0x267   : > { %v1219_v25 = vpop.xlane.xlu1 %1218 }
 0x268   : > { %v1220_v26 = vmul.f32 0.00390625, %v1219_v25  ;;  %v1221_v27 = vmul.f32 %v1212_v24, %v1212_v24  ;;  %v1223_v30 = vsub.f32 %v1139_v8, %v1212_v24  ;;  %v1224_v31 = vsub.f32 %v1141_v11, %v1212_v24  ;;  %v1246_v25 = vld [vmem:[%s3436_s2] sm:$0xf] }
 0x269   : > { %v1225_v32 = vsub.f32 %v1180_v9, %v1212_v24 }
 0x26a   : > { %v1222_v28 = vsub.f32 %v1220_v26, %v1221_v27 }
 0x26c   : > { %v1226_v29 = vadd.f32 1e-05, %v1222_v28 }
 0x26e   : > { %2806 = vrsqrt.f32 %v1226_v29 }
 0x278   : > { %v2807_v33 = vpop.eup %2806 }
 0x279   : > { %v1228_v34 = vmul.f32 %v2807_v33, %v1223_v30  ;;  %v1229_v35 = vmul.f32 %v2807_v33, %v1224_v31  ;;  %v1230_v36 = vmul.f32 %v2807_v33, %v1225_v32 }
 0x27b   : > { %v1231_v37 = vmax.f32 %v1228_v34, 0.0  ;;  %v1232_v38 = vmax.f32 %v1229_v35, 0.0  ;;  %v1233_v39 = vmax.f32 %v1230_v36, 0.0  ;;  %v2369_v34 = vld [vmem:[%s3436_s2 + $0x8] sm:$0xf] }
 0x27d   : > { %v3189_v40 = vmul.f32 %v1231_v37, %v3179_v63  ;;  %v3192_v41 = vmul.f32 %v1232_v38, %v3181_v2  ;;  %v3195_v42 = vmul.f32 %v1233_v39, %v3183_v4 }
 0x27f   : > { %1254 = vrot.lane.b32.xlu1 %v3195_v42, %s2877_s6  ;;  %v2765_v43 = vpack.i.bf16 %v3192_v41, %v3189_v40  ;;  %v1675_v37 = vpack.c.bf16 %v3192_v41, %v3192_v41  ;;  %v1676_v41 = vpack.c.bf16 %v3195_v42, %v3195_v42 }
 0x281   : > { %2766 = vrot.lane.b32.xlu0 %v2765_v43, %s2877_s6 }
 0x283   : > { %1241 = vrot.lane.b32.xlu1 %v3195_v42, %s2878_s7 }
 0x285   : > { %2771 = vrot.lane.b32.xlu0 %v2765_v43, %s2878_s7  ;;  %s188_s7 = sand.u32 1, %s2864_s16  }
 0x287   : > { %1456 = vrot.lane.b32.xlu1 %v3195_v42, %s2879_s8 }
 0x289   : > { %2776 = vrot.lane.b32.xlu0 %v2765_v43, %s2879_s8  ;;  %s2672_s8 = smul.u32 24, %s188_s7 }
 0x28b   : > { %1566 = vrot.lane.b32.xlu1 %v3195_v42, %s2880_s9 }
 0x28d   : > { %2781 = vrot.lane.b32.xlu0 %v2765_v43, %s2880_s9  ;;  %s2674_s9 = smul.u32 384, %s2932_s19  ;;  %s2249_s19 = scalar_lea.sflag [#allocation3], %s188_s7 }
 0x28f   : > { %1777 = vrot.lane.b32.xlu1 %v3195_v42, %s2881_s10  ;;  %s3392_s22 = scalar_lea.hbm %s3438_s4, %s2674_s9 }
 0x291   : > { %2786 = vrot.lane.b32.xlu0 %v2765_v43, %s2881_s10  ;;  %s190_s10 = scalar_lea.vmem [#allocation2], %s2672_s8 }
 0x293   : > { %1887 = vrot.lane.b32.xlu1 %v3195_v42, %s2882_s11 }
 0x295   : > { %2791 = vrot.lane.b32.xlu0 %v2765_v43, %s2882_s11  ;;  %s2263_s11 = sshll.u32 %s190_s10, 4  ;;  %s3394_s11 = int_to_ptr.vmem [resolvable:$true] %s2263_s11 }
 0x296   : > { %s2810_s23 = scalar_lea.vmem %s3394_s11, 384  ;;  %p2817_p0 = scmp.lt.s32.totalorder %s3394_s11, %s2815_s28 }
 0x297   : > { %1997 = vrot.lane.b32.xlu1 %v3195_v42, %s2883_s12  ;;  %p2811_p11 = scmp.ne.s32.totalorder %s3394_s11, %s2810_s23  ;;  %p2818_p1 = scmp.lt.s32.totalorder %s2816_s29, %s2810_s23 }
 0x299   : > { %2796 = vrot.lane.b32.xlu0 %v2765_v43, %s2883_s12  ;;  %p2812_p12 = pnand %p2811_p11, %p2949_p5  ;;  %p2819_p2 = por %p2818_p1, %p2817_p0 }
 0x29b   : > { %2107 = vrot.lane.b32.xlu1 %v3195_v42, %s2884_s13  ;;  %p2813_p13 = pneg %p2812_p12 }
 0x29d   : > { %2801 = vrot.lane.b32.xlu0 %v2765_v43, %s2884_s13  ;;  %p2820_p3 = pnand %p2819_p2, %p2813_p13 }
 0x2f1   : > { %v1255_v44 = vpop.permute.xlu1 %1254 }
 0x2f3   : > { %v2767_v45 = vpop.permute.xlu0 %2766 }
 0x2f4   : > { %v2769_v46 = vunpack.i.h.bf16 %v2767_v45  ;;  %v2768_v47 = vunpack.i.l.bf16 %v2767_v45 }
 0x2f5   : > { %v1242_v57 = vpop.permute.xlu1 %1241 }
 0x2f6   : > { %v1257_v48 = vsel %vm225_vm1, %v2768_v47, %v2769_v46  ;;  %v1258_v49 = vsel %vm225_vm1, %v1255_v44, %v2768_v47  ;;  %v1256_v50 = vsel %vm225_vm1, %v2769_v46, %v1255_v44  ;;  %v1674_v44 = vpack.c.bf16 %v3189_v40, %v3189_v40  ;;  %v2373_v46 = vld [vmem:[%s3436_s2 + $0xc] sm:$0xf] }
 0x2f7   : > { %v1262_v51 = vpack.c.bf16 %v1257_v48, %v1257_v48  ;;  %v2772_v52 = vpop.permute.xlu0 %2771  ;;  %v1261_v53 = vpack.c.bf16 %v1258_v49, %v1258_v49  ;;  %v1263_v54 = vpack.c.bf16 %v1256_v50, %v1256_v50  ;;  %v1687_v49 = vsel %vm1268_vm11, %v1676_v41, 0 }
 0x2f8   : > { %v2774_v55 = vunpack.i.h.bf16 %v2772_v52  ;;  %v2773_v56 = vunpack.i.l.bf16 %v2772_v52  ;;  %v1681_v48 = vsel %vm1268_vm11, %v1674_v44, 0 }
 0x2f9   : > { %2363 = vmatprep.subr.msk.bf16.mxu0 %vm1268_vm11, %v1262_v51  ;;  %v1270_v58 = vsel %vm1268_vm11, %v1261_v53, 0  ;;  %v1276_v59 = vsel %vm1268_vm11, %v1263_v54, 0  ;;  %v1457_v17 = vpop.permute.xlu1 %1456 }
 0x2fa   : > { %v1244_v60 = vsel %vm211_vm2, %v2773_v56, %v2774_v55  ;;  %1279 = vmatpush1.bf16.msra.mxu0 %v1270_v58  ;;  %2491 = vmatpush3.bf16.msra.mxu1 %v1276_v59  ;;  %v1245_v62 = vsel %vm211_vm2, %v1242_v57, %v2773_v56  ;;  %v1243_v8 = vsel %vm211_vm2, %v2774_v55, %v1242_v57  ;;  %v2377_v57 = vld [vmem:[%s3436_s2 + $0x10] sm:$0xf] }
 0x2fb   : > { %v1248_v9 = vpack.c.bf16 %v1244_v60, %v1244_v60  ;;  %v2777_v10 = vpop.permute.xlu0 %2776  ;;  %2496 = vmatprep.subr.bf16.mxu1 %v2874_v0  ;;  %v1247_v11 = vpack.c.bf16 %v1245_v62, %v1245_v62  ;;  %v1249_v12 = vpack.c.bf16 %v1243_v8, %v1243_v8 }
 0x2fc   : > { %v2779_v6 = vunpack.i.h.bf16 %v2777_v10  ;;  %v2778_v1 = vunpack.i.l.bf16 %v2777_v10 }
 0x2fd   : > { %2364 = vmatmul.mubr.msk.bf16.vlgmr.msra.gmra.mrb[4].mxu0 %vm1264_vm12, %v2362_v61  ;;  %2493 = vmatmul.mubr.msk.bf16.vlgmr.msra.gmra.mrb[4].mxu1 %vm1264_vm12, %v2362_v61  ;;  %v1363_v5 = vsel %vm1268_vm11, %v1247_v11, 0  ;;  %v1369_v13 = vsel %vm1268_vm11, %v1249_v12, 0  ;;  %v1567_v29 = vpop.permute.xlu1 %1566 }
 0x2fe   : > { %v1459_v14 = vsel %vm428_vm4, %v2778_v1, %v2779_v6  ;;  %2366 = vmatprep.subr.msk.bf16.mxu0 %vm1268_vm11, %v1248_v9  ;;  %2497 = vmatpush3.bf16.msra.mxu1 %v1369_v13  ;;  %v1460_v20 = vsel %vm428_vm4, %v1457_v17, %v2778_v1  ;;  %v1458_v21 = vsel %vm428_vm4, %v2779_v6, %v1457_v17 }
 0x2ff   : > { %v1464_v15 = vpack.c.bf16 %v1459_v14, %v1459_v14  ;;  %1372 = vmatpush1.bf16.msra.mxu0 %v1363_v5  ;;  %v2782_v16 = vpop.permute.xlu0 %2781  ;;  %1403 = vmatprep.mubr.bf16.mxu0 %v2875_v3  ;;  %v1463_v22 = vpack.c.bf16 %v1460_v20, %v1460_v20  ;;  %v1465_v23 = vpack.c.bf16 %v1458_v21, %v1458_v21  ;;  %v2381_v5 = vld [vmem:[%s3436_s2 + $0x14] sm:$0xf] }
 0x300   : > { %2498 = vmatprep.mubr.msk.bf16.mxu1 %vm2876_vm0, %v2874_v0  ;;  %2502 = vmatprep.subr.bf16.mxu1 %v2874_v0  ;;  %v2784_v18 = vunpack.i.h.bf16 %v2782_v16  ;;  %v2783_v19 = vunpack.i.l.bf16 %v2782_v16 }
 0x301   : > { %2370 = vmatprep.subr.msk.bf16.mxu0 %vm1268_vm11, %v1464_v15  ;;  %v1470_v27 = vsel %vm1268_vm11, %v1463_v22, 0  ;;  %v1476_v28 = vsel %vm1268_vm11, %v1465_v23, 0  ;;  %v1778_v43 = vpop.permute.xlu1 %1777 }
 0x302   : > { %v1569_v24 = vsel %vm539_vm6, %v2783_v19, %v2784_v18  ;;  %v1570_v30 = vsel %vm539_vm6, %v1567_v29, %v2783_v19  ;;  %v1568_v31 = vsel %vm539_vm6, %v2784_v18, %v1567_v29 }
 0x303   : > { %v1574_v26 = vpack.c.bf16 %v1569_v24, %v1569_v24  ;;  %v1573_v32 = vpack.c.bf16 %v1570_v30, %v1570_v30  ;;  %v1575_v33 = vpack.c.bf16 %v1568_v31, %v1568_v31  ;;  %v2787_v38 = vpop.permute.xlu0 %2786 }
 0x304   : > { %v2789_v39 = vunpack.i.h.bf16 %v2787_v38  ;;  %v2788_v40 = vunpack.i.l.bf16 %v2787_v38 }
 0x305   : > { %v1580_v35 = vsel %vm1268_vm11, %v1573_v32, 0  ;;  %v1586_v36 = vsel %vm1268_vm11, %v1575_v33, 0  ;;  %v1888_v53 = vpop.permute.xlu1 %1887 }
 0x306   : > { %v1779_v45 = vsel %vm751_vm7, %v2789_v39, %v1778_v43  ;;  %v1780_v51 = vsel %vm751_vm7, %v2788_v40, %v2789_v39  ;;  %v1781_v52 = vsel %vm751_vm7, %v1778_v43, %v2788_v40 }
 0x307   : > { %v1785_v47 = vpack.c.bf16 %v1779_v45, %v1779_v45  ;;  %v2792_v42 = vpop.permute.xlu0 %2791  ;;  %v1784_v54 = vpack.c.bf16 %v1780_v51, %v1780_v51  ;;  %v1786_v55 = vpack.c.bf16 %v1781_v52, %v1781_v52 }
 0x308   : > { %v2794_v50 = vunpack.i.h.bf16 %v2792_v42  ;;  %v2793_v61 = vunpack.i.l.bf16 %v2792_v42 }
 0x309   : > { %2367 = vmatmul.mubr.msk.bf16.vlgmr.msra.gmra.mrb[4].mxu0 %vm1264_vm12, %v1246_v25  ;;  %2499 = vmatmul.mubr.msk.bf16.vlgmr.msra.gmra.mrb[4].mxu1 %vm1264_vm12, %v1246_v25  ;;  %v1791_v59 = vsel %vm1268_vm11, %v1784_v54, 0  ;;  %v1797_v60 = vsel %vm1268_vm11, %v1786_v55, 0  ;;  %v1998_v11 = vpop.permute.xlu1 %1997  ;;  %v2385_v25 = vld [vmem:[%s3436_s2 + $0x18] sm:$0xf] }
 0x30a   : > { %1479 = vmatpush1.bf16.msra.mxu0 %v1470_v27  ;;  %2503 = vmatpush3.bf16.msra.mxu1 %v1476_v28  ;;  %v1889_v56 = vsel %vm862_vm8, %v2794_v50, %v1888_v53  ;;  %v1890_v9 = vsel %vm862_vm8, %v2793_v61, %v2794_v50  ;;  %v1891_v10 = vsel %vm862_vm8, %v1888_v53, %v2793_v61 }
 0x30b   : > { %2374 = vmatprep.subr.msk.bf16.mxu0 %vm1268_vm11, %v1574_v26  ;;  %1510 = vmatprep.mubr.bf16.mxu0 %v2875_v3  ;;  %v1895_v58 = vpack.c.bf16 %v1889_v56, %v1889_v56  ;;  %v2797_v62 = vpop.permute.xlu0 %2796  ;;  %v1894_v12 = vpack.c.bf16 %v1890_v9, %v1890_v9  ;;  %v1896_v6 = vpack.c.bf16 %v1891_v10, %v1891_v10 }
 0x30c   : > { %2504 = vmatprep.mubr.msk.bf16.mxu1 %vm2876_vm0, %v2874_v0  ;;  %2508 = vmatprep.subr.bf16.mxu1 %v2874_v0  ;;  %v2799_v8 = vunpack.i.h.bf16 %v2797_v62  ;;  %v2798_v16 = vunpack.i.l.bf16 %v2797_v62 }
 0x30d   : > { %v1901_v14 = vsel %vm1268_vm11, %v1894_v12, 0  ;;  %v1907_v15 = vsel %vm1268_vm11, %v1896_v6, 0  ;;  %v2108_v21 = vpop.permute.xlu1 %2107 }
 0x30e   : > { %v1999_v1 = vsel %vm973_vm9, %v2799_v8, %v1998_v11  ;;  %v2000_v19 = vsel %vm973_vm9, %v2798_v16, %v2799_v8  ;;  %v2001_v20 = vsel %vm973_vm9, %v1998_v11, %v2798_v16 }
 0x30f   : > { %v2005_v13 = vpack.c.bf16 %v1999_v1, %v1999_v1  ;;  %v2802_v17 = vpop.permute.xlu0 %2801  ;;  %v2004_v22 = vpack.c.bf16 %v2000_v19, %v2000_v19  ;;  %v2006_v23 = vpack.c.bf16 %v2001_v20, %v2001_v20 }
 0x310   : > { %v2804_v18 = vunpack.i.h.bf16 %v2802_v17  ;;  %v2803_v29 = vunpack.i.l.bf16 %v2802_v17 }
 0x311   : > { %v2011_v27 = vsel %vm1268_vm11, %v2004_v22, 0  ;;  %v2017_v28 = vsel %vm1268_vm11, %v2006_v23, 0 }
 0x312   : > { %v2109_v24 = vsel %vm1084_vm10, %v2804_v18, %v2108_v21  ;;  %v2110_v30 = vsel %vm1084_vm10, %v2803_v29, %v2804_v18  ;;  %v2111_v31 = vsel %vm1084_vm10, %v2108_v21, %v2803_v29 }
 0x313   : > { %v2115_v26 = vpack.c.bf16 %v2109_v24, %v2109_v24  ;;  %v2114_v32 = vpack.c.bf16 %v2110_v30, %v2110_v30  ;;  %v2116_v33 = vpack.c.bf16 %v2111_v31, %v2111_v31 }
 0x315   : > { %2371 = vmatmul.mubr.msk.bf16.vlgmr.msra.gmra.mrb[4].mxu0 %vm1264_vm12, %v2369_v34  ;;  %2505 = vmatmul.mubr.msk.bf16.vlgmr.msra.gmra.mrb[4].mxu1 %vm1264_vm12, %v2369_v34  ;;  %v2389_v34 = vld [vmem:[%s3436_s2 + $0x1c] sm:$0xf] }
 0x316   : > { %1589 = vmatpush1.bf16.msra.mxu0 %v1580_v35  ;;  %2509 = vmatpush3.bf16.msra.mxu1 %v1586_v36  ;;  %v2121_v35 = vsel %vm1268_vm11, %v2114_v32, 0  ;;  %v2127_v36 = vsel %vm1268_vm11, %v2116_v33, 0 }
 0x317   : > { %2378 = vmatprep.subr.msk.bf16.mxu0 %vm1268_vm11, %v1675_v37  ;;  %1620 = vmatprep.mubr.bf16.mxu0 %v2875_v3 }
 0x318   : > { %2510 = vmatprep.mubr.msk.bf16.mxu1 %vm2876_vm0, %v2874_v0  ;;  %2514 = vmatprep.subr.bf16.mxu1 %v2874_v0 }
 0x321   : > { %2375 = vmatmul.mubr.msk.bf16.vlgmr.msra.gmra.mrb[4].mxu0 %vm1264_vm12, %v2373_v46  ;;  %2511 = vmatmul.mubr.msk.bf16.vlgmr.msra.gmra.mrb[4].mxu1 %vm1264_vm12, %v2373_v46 }
 0x322   : > { %1690 = vmatpush1.bf16.msra.mxu0 %v1681_v48  ;;  %2515 = vmatpush3.bf16.msra.mxu1 %v1687_v49 }
 0x323   : > { %2382 = vmatprep.subr.msk.bf16.mxu0 %vm1268_vm11, %v1785_v47  ;;  %1721 = vmatprep.mubr.bf16.mxu0 %v2875_v3 }
 0x324   : > { %2516 = vmatprep.mubr.msk.bf16.mxu1 %vm2876_vm0, %v2874_v0  ;;  %2520 = vmatprep.subr.bf16.mxu1 %v2874_v0 }
 0x32d   : > { %2379 = vmatmul.mubr.msk.bf16.vlgmr.msra.gmra.mrb[4].mxu0 %vm1264_vm12, %v2377_v57  ;;  %2517 = vmatmul.mubr.msk.bf16.vlgmr.msra.gmra.mrb[4].mxu1 %vm1264_vm12, %v2377_v57 }
 0x32e   : > { %1800 = vmatpush1.bf16.msra.mxu0 %v1791_v59  ;;  %2521 = vmatpush3.bf16.msra.mxu1 %v1797_v60 }
 0x32f   : > { %2386 = vmatprep.subr.msk.bf16.mxu0 %vm1268_vm11, %v1895_v58  ;;  %1831 = vmatprep.mubr.bf16.mxu0 %v2875_v3 }
 0x330   : > { %2522 = vmatprep.mubr.msk.bf16.mxu1 %vm2876_vm0, %v2874_v0  ;;  %2526 = vmatprep.subr.bf16.mxu1 %v2874_v0 }
 0x339   : > { %2383 = vmatmul.mubr.msk.bf16.vlgmr.msra.gmra.mrb[4].mxu0 %vm1264_vm12, %v2381_v5  ;;  %2523 = vmatmul.mubr.msk.bf16.vlgmr.msra.gmra.mrb[4].mxu1 %vm1264_vm12, %v2381_v5 }
 0x33a   : > { %1910 = vmatpush1.bf16.msra.mxu0 %v1901_v14  ;;  %2527 = vmatpush3.bf16.msra.mxu1 %v1907_v15 }
 0x33b   : > { %2390 = vmatprep.subr.msk.bf16.mxu0 %vm1268_vm11, %v2005_v13  ;;  %1941 = vmatprep.mubr.bf16.mxu0 %v2875_v3 }
 0x33c   : > { %2528 = vmatprep.mubr.msk.bf16.mxu1 %vm2876_vm0, %v2874_v0  ;;  %2532 = vmatprep.subr.bf16.mxu1 %v2874_v0 }
 0x345   : > { %2387 = vmatmul.mubr.msk.bf16.vlgmr.msra.gmra.mrb[4].mxu0 %vm1264_vm12, %v2385_v25  ;;  %2529 = vmatmul.mubr.msk.bf16.vlgmr.msra.gmra.mrb[4].mxu1 %vm1264_vm12, %v2385_v25 }
 0x346   : > { %2020 = vmatpush1.bf16.msra.mxu0 %v2011_v27  ;;  %2533 = vmatpush3.bf16.msra.mxu1 %v2017_v28 }
 0x347   : > { %2394 = vmatprep.subr.msk.bf16.mxu0 %vm1268_vm11, %v2115_v26  ;;  %2051 = vmatprep.mubr.bf16.mxu0 %v2875_v3 }
 0x348   : > { %2534 = vmatprep.mubr.msk.bf16.mxu1 %vm2876_vm0, %v2874_v0  ;;  %2538 = vmatprep.subr.bf16.mxu1 %v2874_v0 }
 0x351   : > { %2391 = vmatmul.mubr.msk.bf16.vlgmr.msra.gmra.mrb[4].mxu0 %vm1264_vm12, %v2389_v34  ;;  %2535 = vmatmul.mubr.msk.bf16.vlgmr.msra.gmra.mrb[4].mxu1 %vm1264_vm12, %v2389_v34 }
 0x352   : > { %2130 = vmatpush1.bf16.msra.mxu0 %v2121_v35  ;;  %2539 = vmatpush3.bf16.msra.mxu1 %v2127_v36 }
 0x353   : > { %2161 = vmatprep.mubr.bf16.mxu0 %v2875_v3  ;;  %2540 = vmatprep.mubr.msk.bf16.mxu1 %vm2876_vm0, %v2874_v0 }
 0x35d   : > { %2395 = vmatmul.mubr.msk.bf16.vlgmr.msra.gmra.mrb[4].mxu0 %vm1264_vm12, %v2393_v7  ;;  %2541 = vmatmul.mubr.msk.bf16.vlgmr.msra.gmra.mrb[4].mxu1 %vm1264_vm12, %v2393_v7 }
 0x430   : > { %v2163_v37 = vpop.f32.mrb[4].mxu0  ;;  %v2204_v38 = vpop.f32.mrb[4].mxu1 }
 0x431   : > { %v2213_v39 = vmul.f32 %v2163_v37, %v3179_v63  ;;  %v2165_v43 = vpop.f32.mrb[5].mxu0  ;;  %v2542_v44 = vpop.f32.mrb[5].mxu1  ;;  %v2215_v0 = vmul.f32 %v2204_v38, %v3183_v4 }
 0x432   : > { %v2214_v41 = vmul.f32 %v2165_v43, %v3181_v2  ;;  %v2167_v3 = vpop.f32.mrb[6].mxu0  ;;  %v2207_v45 = vpop.f32.mrb[6].mxu1 }
 0x433   : > { %v2221_v46 = vmul.f32 %v2213_v39, %v2163_v37  ;;  %v2168_v47 = vpop.f32.mrb[7].mxu0  ;;  %v2543_v48 = vpop.f32.mrb[7].mxu1  ;;  %v2223_v50 = vmul.f32 %v2215_v0, %v2204_v38 }
 0x434   : > { %v2222_v49 = vmul.f32 %v2214_v41, %v2165_v43  ;;  %v2216_v40 = vadd.f32 %v2214_v41, %v2213_v39 }
 0x436   : > { %v2217_v42 = vadd.f32 %v2216_v40, %v2215_v0  ;;  %v2224_v51 = vadd.f32 %v2222_v49, %v2221_v46 }
 0x438   : > { %2218 = vadd.xlane.f32.xlu0 %v2217_v42  ;;  %v2225_v52 = vadd.f32 %v2224_v51, %v2223_v50 }
 0x43a   : > { %2226 = vadd.xlane.f32.xlu1 %v2225_v52 }
 0x4c5   : > { %v2219_v53 = vpop.xlane.xlu0 %2218 }
 0x4c6   : > { %v2220_v54 = vmul.f32 0.00390625, %v2219_v53 }
 0x4c7   : > { %v2227_v55 = vpop.xlane.xlu1 %2226 }
 0x4c8   : > { %v2228_v56 = vmul.f32 0.00390625, %v2227_v55  ;;  %v2229_v57 = vmul.f32 %v2220_v54, %v2220_v54  ;;  %v2231_v60 = vsub.f32 %v2163_v37, %v2220_v54  ;;  %v2232_v61 = vsub.f32 %v2165_v43, %v2220_v54 }
 0x4c9   : > { %v2233_v62 = vsub.f32 %v2204_v38, %v2220_v54 }
 0x4ca   : > { %v2230_v58 = vsub.f32 %v2228_v56, %v2229_v57 }
 0x4cc   : > { %v2234_v59 = vadd.f32 1e-05, %v2230_v58 }
 0x4ce   : > { %2808 = vrsqrt.f32 %v2234_v59 }
 0x4d8   : > { %v2809_v8 = vpop.eup %2808 }
 0x4d9   : > { %v2236_v9 = vmul.f32 %v2809_v8, %v2231_v60  ;;  %v2237_v10 = vmul.f32 %v2809_v8, %v2232_v61  ;;  %v2238_v11 = vmul.f32 %v2809_v8, %v2233_v62 }
 0x4db   : > { %v2239_v12 = vmax.f32 %v2236_v9, 0.0  ;;  %v2240_v6 = vmax.f32 %v2237_v10, 0.0  ;;  %v2241_v1 = vmax.f32 %v2238_v11, 0.0 }
 0x4dd   : > { %v2242_v5 = vmul.f32 %v2239_v12, %v3179_v63  ;;  %v2243_v13 = vmul.f32 %v2240_v6, %v3181_v2  ;;  %v2244_v14 = vmul.f32 %v2241_v1, %v3183_v4 }
 0x4df   : > { %2245 = vst [vmem:[%s190_s10] sm:$0xff] %v2242_v5  ;;  %2246 = vst [vmem:[%s190_s10 + $0x8] sm:$0xff] %v2243_v13 }
 0x4e0   : > { %2247 = vst [vmem:[%s190_s10 + $0x10] sm:$0xff] %v2244_v14 }
 0x4e1   : > { %2823 = shalt.err (!%p2820_p3)
}
 0x4e2   : > { %s2824_s30 = scalar_lea.hbm %s3392_s22, 384  ;;  %s2828_s20 = scalar_lea.hbm %s3438_s4, 768 }
 0x4e3   : > { %p2825_p4 = scmp.ne.s32.totalorder %s3392_s22, %s2824_s30  ;;  %p2829_p9 = scmp.lt.u32.totalorder %s3392_s22, %s3438_s4 }
 0x4e4   : > { %p2830_p10 = scmp.lt.u32.totalorder %s2828_s20, %s2824_s30  ;;  %p2832_p12 = scmp.lt.u32.totalorder %s2824_s30, %s3392_s22 }
 0x4e5   : > { %p2826_p7 = pnand %p2825_p4, %p2949_p5 }
 0x4e6   : > { %p2831_p11 = por %p2830_p10, %p2829_p9 }
 0x4e7   : > { %p2827_p8 = pneg %p2826_p7 }
 0x4e8   : > { %p2833_p13 = por %p2832_p12, %p2831_p11 }
 0x4ea   : > { %p2834_p0 = pnand %p2833_p13, %p2827_p8 }
 0x4ec   : > { %2837 = shalt.err (!%p2834_p0)
}
 0x4ed   : > { %2675 = dma.vmem_to_hbm [thread:$0]  (%p2949_p5), %s3394_s11, 384, %s3392_s22, %s2249_s19  }
 0x4ee PF: > { %p2681_p1 = scmp.ge.s32.totalorder %s2872_s18, 2  ;;  %s2275_s8 = sand.u32 1, %s2860_s15  }
 0x4ef   : > { %s2276_s9 = scalar_lea.sflag [#allocation3], %s2275_s8 }
 0x4f0   : > { %p2678_p2 = pnand %p2681_p1, %p2953_p6 }
 0x4f2   : > { %2855 = dma.done.wait (!%p2678_p2), %s2276_s9, 384  }
 0x4f3   : > { %2857 = vsyncadd (!%p2678_p2), %s2276_s9, 4294966912  ;;  %p14_p3 = scmp.ge.s32.totalorder %s2936_s21, 4   ;;  %s3441_s15 = smov %s2864_s16 }
 0x4f4   : > { %s3442_s16 = smov %s2868_s17  ;;  %s3443_s17 = smov %s2947_s24 }
 0x4f5   : > { %s3444_s18 = smov %s2936_s21  ;;  %16 = sbr.rel (!%p14_p3) target bundleno = 3 (0x3), region = 87 }
 0x4fc   :  { %2281 = vsyncpa [#allocation3], 1 }
 0x4fd   :  { %2283 = vsyncpa [#allocation3 + $0x1], 1 }

</bundles_post_ra>
